<compile_context>
chip_gen: v5e
topology: v5e:2x2
jax: 0.10.0
libtpu: 0.0.40
codegen_flags: <defaults>
</compile_context>

<pallas_src>
import functools

import jax
import jax.numpy as jnp
from jax.experimental import pallas as pl
from jax.experimental.pallas import tpu as pltpu

LANE = 128                     # lane width: class / hidden dims pad to this
SUBLANE_F32 = 8                # f32 sublane granularity for batch tiles
SUBLANE_BF16 = 16              # bf16 sublane packing granularity
H_CHUNK = 512                  # hidden-dim chunk per inner-loop step
NEG_PAD = -1e30                # finite "-inf" for padded class columns (NaN-safe)
VMEM_BUDGET = 40 * 1024 * 1024  # keep estimated VMEM well under v7x's 64 MiB/TC


def _round_up(x, m):
    return (x + m - 1) // m * m


def mlp_kernel(x_ref, w1_ref, b1_ref, w2_ref, b2_ref, out_ref, *,
               h_chunk, n_chunks, matmul_dtype):
    """Fused Linear+ReLU+Linear+log_softmax for one batch tile.

    The hidden dimension is walked in `h_chunk`-wide slices so only a
    (tile, h_chunk) piece of the ReLU intermediate is ever live.
    """
    x = x_ref[...]                                   # (tile, F), matmul_dtype
    tile = x.shape[0]
    c_pad = out_ref.shape[-1]

    # Accumulator starts at the broadcast output bias.  Padded class columns
    # carry NEG_PAD so they drop out of the log-softmax below.  (Broadcast is
    # hoisted out of the loop on purpose — JAX does not CSE broadcast_in_dim.)
    logits0 = jnp.broadcast_to(b2_ref[...], (tile, c_pad)).astype(jnp.float32)

    def body(c, logits):
        off = pl.multiple_of(c * h_chunk, h_chunk)
        # hidden chunk: MXU matmul (f32 accumulate) + bias + ReLU (VPU, f32)
        h = jnp.dot(x, w1_ref[:, pl.ds(off, h_chunk)],
                    preferred_element_type=jnp.float32)
        h = jnp.maximum(h + b1_ref[:, pl.ds(off, h_chunk)], 0.0)
        # accumulate this chunk's contribution to the logits
        return logits + jnp.dot(h.astype(matmul_dtype),
                                w2_ref[pl.ds(off, h_chunk), :],
                                preferred_element_type=jnp.float32)

    logits = jax.lax.fori_loop(0, n_chunks, body, logits0, unroll=True)

    # log_softmax over the lane-padded class axis.  Padded columns sit at
    # ~NEG_PAD: they never win the max and exp() underflows to exactly 0 in
    # the sum, so the LSE only sees real classes.  (Keep NEG_PAD finite —
    # -inf would give inf-inf = NaN in the padded columns.)
    m = jnp.max(logits, axis=-1, keepdims=True)
    lse = m + jnp.log(jnp.sum(jnp.exp(logits - m), axis=-1, keepdims=True))
    out_ref[...] = (logits - lse).astype(out_ref.dtype)


def prepare_params(w1, b1, w2, b2, *, matmul_dtype=jnp.float32):
    """Pad / cast the Linear parameters ONCE (call at init, not per forward).

    w1: (F, H) == h1_weights.weight.T      b1: (H,) or (1, H)
    w2: (H, C) == last_weights.weight.T    b2: (C,) or (1, C)
    """
    F, H = w1.shape
    C = w2.shape[1]

    # Hidden padding: one lane group for tiny H; 256-aligned (v6e/v7x MXU is
    # 2x256x256) for moderate H; multiple of H_CHUNK so the chunk loop divides
    # evenly for large H.  Classes are NOT padded beyond 128 (wasted writeback)
    # and F is never padded (would multiply x DMA).
    if H <= LANE:
        H_pad = LANE
    elif H <= H_CHUNK:
        H_pad = _round_up(H, 2 * LANE)
    else:
        H_pad = _round_up(H, H_CHUNK)
    C_pad = _round_up(C, LANE)

    b1 = jnp.asarray(b1, jnp.float32).reshape(1, H)
    b2 = jnp.asarray(b2, jnp.float32).reshape(1, C)

    w1_p = jnp.pad(jnp.asarray(w1, matmul_dtype), ((0, 0), (0, H_pad - H)))
    b1_p = jnp.pad(b1, ((0, 0), (0, H_pad - H)))
    w2_p = jnp.pad(jnp.asarray(w2, matmul_dtype),
                   ((0, H_pad - H), (0, C_pad - C)))
    b2_p = jnp.pad(b2, ((0, 0), (0, C_pad - C)), constant_values=NEG_PAD)

    return dict(w1=w1_p, b1=b1_p, w2=w2_p, b2=b2_p,
                F=F, H=H, C=C, H_pad=H_pad, C_pad=C_pad,
                matmul_dtype=matmul_dtype)


def _vmem_estimate(tile, F, H_pad, C_pad, chunk, mm_bytes, out_bytes):
    """Rough VMEM footprint: pipelined x/out tiles + resident params + live values."""
    io = 2 * tile * F * mm_bytes + 2 * tile * C_pad * out_bytes
    params = 2 * (F * H_pad * mm_bytes + H_pad * 4
                  + H_pad * C_pad * mm_bytes + C_pad * 4)
    live = tile * chunk * 4 + 2 * tile * C_pad * 4 + tile * F * 4
    return io + params + live


def mlp_classifier_forward(x, params, *, tile_b=512, out_dtype=jnp.float32,
                           trim_classes=True):
    """x: (B, F); params: output of prepare_params."""
    assert x.ndim == 2
    B, F = x.shape
    assert F == params["F"], "feature dim mismatch"
    H_pad, C_pad, C = params["H_pad"], params["C_pad"], params["C"]
    matmul_dtype = params["matmul_dtype"]
    mm_bytes = jnp.dtype(matmul_dtype).itemsize
    out_bytes = jnp.dtype(out_dtype).itemsize

    chunk = min(H_pad, H_CHUNK)
    n_chunks = H_pad // chunk

    # ---- batch tile selection (no batch padding; boundary block is masked) ----
    sub = SUBLANE_BF16 if mm_bytes < 4 else SUBLANE_F32
    tile = _round_up(min(tile_b, B), sub)
    # Keep >= 2 grid steps when the batch allows it so v7x's second TensorCore
    # gets work on the "parallel" batch axis (no-op on v5e/v6e single-TC).
    tile = min(tile, max(_round_up(pl.cdiv(B, 2), sub), sub))
    # Respect VMEM budgets (v5e 16 MiB scoped default is overridden below;
    # stay well under v7x's 64 MiB/TC, since each TC holds its own weights).
    while tile > sub and _vmem_estimate(tile, F, H_pad, C_pad, chunk,
                                        mm_bytes, out_bytes) > VMEM_BUDGET:
        tile = _round_up(tile // 2, sub)
    # TODO(synk): if the resident weights alone exceed the budget (huge F*H),
    # add a contraction-axis (F) tiling fallback instead of shrinking `tile`.

    grid = (pl.cdiv(B, tile),)
    est = _vmem_estimate(tile, F, H_pad, C_pad, chunk, mm_bytes, out_bytes)
    vmem_limit = int(min(max(2 * est, 32 * 1024 * 1024), 64 * 1024 * 1024))

    cost = pl.CostEstimate(
        flops=2 * B * (F * H_pad + H_pad * C_pad),
        transcendentals=B * (C_pad + 1),               # exp per logit + log per row
        bytes_accessed=(mm_bytes * (B * F + F * H_pad + H_pad * C_pad)
                        + 4 * (H_pad + C_pad) + out_bytes * B * C_pad),
    )

    kernel = functools.partial(mlp_kernel, h_chunk=chunk, n_chunks=n_chunks,
                               matmul_dtype=matmul_dtype)

    out = pl.pallas_call(
        kernel,
        out_shape=jax.ShapeDtypeStruct((B, C_pad), out_dtype),
        grid=grid,
        in_specs=[
            # activations: one (tile, F) row block per grid step (pipelined)
            pl.BlockSpec((tile, F), lambda i: (i, 0)),
            # weights / biases: whole array, VMEM-resident across the grid
            pl.BlockSpec((F, H_pad), lambda i: (0, 0)),
            pl.BlockSpec((1, H_pad), lambda i: (0, 0)),
            pl.BlockSpec((H_pad, C_pad), lambda i: (0, 0)),
            pl.BlockSpec((1, C_pad), lambda i: (0, 0)),
        ],
        out_specs=pl.BlockSpec((tile, C_pad), lambda i: (i, 0)),
        compiler_params=pltpu.CompilerParams(
            dimension_semantics=("parallel",),
            vmem_limit_bytes=vmem_limit,
        ),
        cost_estimate=cost,
    )(x.astype(matmul_dtype), params["w1"], params["b1"],
      params["w2"], params["b2"])

    # TODO(synk): the training path (nll_loss / argmax / acc when y is given)
    # and the hidden_size == 0 single-Linear variant are not kernelized; fusing
    # argmax/nll into the kernel would cut output writeback ~C_pad x further.
    return out[:, :C] if trim_classes else out


def reference_forward(x, w1, b1, w2, b2):
    h = jnp.maximum(x @ w1 + b1.reshape(1, -1), 0.0)
    logits = h @ w2 + b2.reshape(1, -1)
    return jax.nn.log_softmax(logits, axis=1)


if __name__ == "__main__":
    key = jax.random.PRNGKey(0)
    keys = jax.random.split(key, 10)

    # ---- test 1: module-consistent small shapes; batch not divisible by the
    # tile so the masked boundary block and a multi-step grid are exercised ----
    batch, input_size, hidden_size, num_class = 50, 32, 32, 10
    x = jax.random.normal(keys[0], (batch, input_size), jnp.float32)
    w1 = jax.random.normal(keys[1], (input_size, hidden_size), jnp.float32) * 0.1
    b1 = jax.random.normal(keys[2], (1, hidden_size), jnp.float32) * 0.1
    w2 = jax.random.normal(keys[3], (hidden_size, num_class), jnp.float32) * 0.1
    b2 = jax.random.normal(keys[4], (1, num_class), jnp.float32) * 0.1

    params = prepare_params(w1, b1, w2, b2)            # pad/cast once, at "init"
    out = jax.block_until_ready(
        mlp_classifier_forward(x, params, tile_b=16))  # tile_b=16 is test-only
    ref = reference_forward(x, w1, b1, w2, b2)
    assert out.shape == (batch, num_class)
    assert jnp.allclose(out, ref, atol=1e-5, rtol=1e-5), "mismatch (test 1)"

    # ---- test 2: hidden dim > H_CHUNK exercises the chunked fori_loop path ----
    batch2, feat2, hid2, cls2 = 24, 48, 600, 7
    x2 = jax.random.normal(keys[5], (batch2, feat2), jnp.float32)
    w1b = jax.random.normal(keys[6], (feat2, hid2), jnp.float32) * 0.05
    b1b = jax.random.normal(keys[7], (1, hid2), jnp.float32) * 0.05
    w2b = jax.random.normal(keys[8], (hid2, cls2), jnp.float32) * 0.05
    b2b = jax.random.normal(keys[9], (1, cls2), jnp.float32) * 0.05

    params2 = prepare_params(w1b, b1b, w2b, b2b)
    out2 = jax.block_until_ready(mlp_classifier_forward(x2, params2))
    ref2 = reference_forward(x2, w1b, b1b, w2b, b2b)
    assert out2.shape == (batch2, cls2)
    assert jnp.allclose(out2, ref2, atol=1e-4, rtol=1e-4), "mismatch (test 2)"

    print("KERNEL_OK")
</pallas_src>

<mosaic_0001>
module attributes {stable_mosaic.version = 11 : i64} {
  func.func @mlp_kernel(%arg0: i32, %arg1: memref<16x32xf32, #tpu.memory_space<vmem>>, %arg2: memref<32x128xf32, #tpu.memory_space<vmem>>, %arg3: memref<1x128xf32, #tpu.memory_space<vmem>>, %arg4: memref<128x128xf32, #tpu.memory_space<vmem>>, %arg5: memref<1x128xf32, #tpu.memory_space<vmem>>, %arg6: memref<16x128xf32, #tpu.memory_space<vmem>>) attributes {dimension_semantics = [#tpu.dimension_semantics<parallel>], iteration_bounds = array<i64: 4>, scalar_prefetch = 0 : i64, scratch_operands = 0 : i64, tpu.core_type = #tpu.core_type<tc>, window_params = [{transform_indices = @transform_0, window_bounds = array<i64: 16, 32>}, {pipeline_mode = #tpu.pipeline_mode<synchronous>, transform_indices = @transform_1, window_bounds = array<i64: 32, 128>}, {pipeline_mode = #tpu.pipeline_mode<synchronous>, transform_indices = @transform_2, window_bounds = array<i64: 1, 128>}, {pipeline_mode = #tpu.pipeline_mode<synchronous>, transform_indices = @transform_3, window_bounds = array<i64: 128, 128>}, {pipeline_mode = #tpu.pipeline_mode<synchronous>, transform_indices = @transform_4, window_bounds = array<i64: 1, 128>}, {transform_indices = @transform_5, window_bounds = array<i64: 16, 128>}]} {
    %c0 = arith.constant 0 : index
    %c0_0 = arith.constant 0 : index
    %0 = vector.load %arg1[%c0, %c0_0] : memref<16x32xf32, #tpu.memory_space<vmem>>, vector<16x32xf32>
    %c0_1 = arith.constant 0 : index
    %c0_2 = arith.constant 0 : index
    %1 = vector.load %arg5[%c0_1, %c0_2] : memref<1x128xf32, #tpu.memory_space<vmem>>, vector<1x128xf32>
    %2 = vector.shape_cast %1 : vector<1x128xf32> to vector<1x128xf32>
    %3 = vector.broadcast %2 : vector<1x128xf32> to vector<16x128xf32>
    %c0_i32 = arith.constant 0 : i32
    %c128_i32 = arith.constant 128 : i32
    %4 = arith.muli %c0_i32, %c128_i32 : i32
    %5 = tpu.assume_multiple %4, 128 : i32
    %c0_3 = arith.constant 0 : index
    %6 = arith.index_cast %5 : i32 to index
    %7 = vector.load %arg2[%c0_3, %6] : memref<32x128xf32, #tpu.memory_space<vmem>>, vector<32x128xf32>
    %cst = arith.constant dense<0.000000e+00> : vector<16x128xf32>
    %8 = tpu.matmul %0, %7, %cst {dimension_numbers = #tpu.dot_dimension_numbers<[1], [0], [0], [1], [0, 0, 1, 1], [], []>} : vector<16x32xf32>, vector<32x128xf32>, vector<16x128xf32> -> vector<16x128xf32>
    %c0_4 = arith.constant 0 : index
    %9 = arith.index_cast %5 : i32 to index
    %10 = vector.load %arg3[%c0_4, %9] : memref<1x128xf32, #tpu.memory_space<vmem>>, vector<1x128xf32>
    %11 = vector.broadcast %10 : vector<1x128xf32> to vector<16x128xf32>
    %12 = arith.addf %8, %11 : vector<16x128xf32>
    %cst_5 = arith.constant 0.000000e+00 : f32
    %13 = vector.broadcast %cst_5 : f32 to vector<16x128xf32>
    %14 = arith.maximumf %12, %13 : vector<16x128xf32>
    %15 = arith.index_cast %5 : i32 to index
    %c0_6 = arith.constant 0 : index
    %16 = vector.load %arg4[%15, %c0_6] : memref<128x128xf32, #tpu.memory_space<vmem>>, vector<128x128xf32>
    %cst_7 = arith.constant dense<0.000000e+00> : vector<16x128xf32>
    %17 = tpu.matmul %14, %16, %cst_7 {dimension_numbers = #tpu.dot_dimension_numbers<[1], [0], [0], [1], [0, 0, 1, 1], [], []>} : vector<16x128xf32>, vector<128x128xf32>, vector<16x128xf32> -> vector<16x128xf32>
    %18 = arith.addf %3, %17 : vector<16x128xf32>
    %c1_i32 = arith.constant 1 : i32
    %cst_8 = arith.constant dense<0xFF800000> : vector<16xf32>
    %19 = vector.multi_reduction <maximumf>, %18, %cst_8 [1] : vector<16x128xf32> to vector<16xf32>
    %20 = vector.shape_cast %19 : vector<16xf32> to vector<16x1xf32>
    %21 = vector.broadcast %20 : vector<16x1xf32> to vector<16x128xf32>
    %22 = arith.subf %18, %21 : vector<16x128xf32>
    %23 = math.exp %22 : vector<16x128xf32>
    %cst_9 = arith.constant dense<0.000000e+00> : vector<16xf32>
    %24 = vector.multi_reduction <add>, %23, %cst_9 [1] : vector<16x128xf32> to vector<16xf32>
    %25 = vector.shape_cast %24 : vector<16xf32> to vector<16x1xf32>
    %26 = math.log %25 : vector<16x1xf32>
    %27 = arith.addf %20, %26 : vector<16x1xf32>
    %28 = vector.broadcast %27 : vector<16x1xf32> to vector<16x128xf32>
    %29 = arith.subf %18, %28 : vector<16x128xf32>
    %c0_10 = arith.constant 0 : index
    %c0_11 = arith.constant 0 : index
    %30 = vector.load %arg6[%c0_10, %c0_11] : memref<16x128xf32, #tpu.memory_space<vmem>>, vector<16x128xf32>
    tpu.vector_store %arg6[%c0_10, %c0_11], %29 {strides = array<i32>} : memref<16x128xf32, #tpu.memory_space<vmem>>, vector<16x128xf32>,
    return
  }
  func.func @transform_0(%arg0: i32) -> (i32, i32) {
    %c0_i32 = arith.constant 0 : i32
    %c0_i32_0 = arith.constant 0 : i32
    return %arg0, %c0_i32 : i32, i32
  }
  func.func @transform_1(%arg0: i32) -> (i32, i32) {
    %c0_i32 = arith.constant 0 : i32
    %c0_i32_0 = arith.constant 0 : i32
    %c0_i32_1 = arith.constant 0 : i32
    return %c0_i32, %c0_i32_0 : i32, i32
  }
  func.func @transform_2(%arg0: i32) -> (i32, i32) {
    %c0_i32 = arith.constant 0 : i32
    %c0_i32_0 = arith.constant 0 : i32
    %c0_i32_1 = arith.constant 0 : i32
    return %c0_i32, %c0_i32_0 : i32, i32
  }
  func.func @transform_3(%arg0: i32) -> (i32, i32) {
    %c0_i32 = arith.constant 0 : i32
    %c0_i32_0 = arith.constant 0 : i32
    %c0_i32_1 = arith.constant 0 : i32
    return %c0_i32, %c0_i32_0 : i32, i32
  }
  func.func @transform_4(%arg0: i32) -> (i32, i32) {
    %c0_i32 = arith.constant 0 : i32
    %c0_i32_0 = arith.constant 0 : i32
    %c0_i32_1 = arith.constant 0 : i32
    return %c0_i32, %c0_i32_0 : i32, i32
  }
  func.func @transform_5(%arg0: i32) -> (i32, i32) {
    %c0_i32 = arith.constant 0 : i32
    %c0_i32_0 = arith.constant 0 : i32
    return %arg0, %c0_i32 : i32, i32
  }
}

</mosaic_0001>

<bundles_post_ra>
// kernel: tpu_custom_call.1
= control target key start
LH: loop header
LB: loop body
LE: loop exit
PB: predicated region body
PF: predicated region fallthrough
CT: control target
= control target key end

     0   :  { %10 = vsyncpa [#allocation3], 0  ;;  %s871_s0 = inlined_call_operand.vmem [shape: f32[50,32], index: 0, kind: input, shape index: {}]   ;;  %s872_s1 = inlined_call_operand.vmem [shape: f32[32,128], index: 1, kind: input, shape index: {}]   ;;  %s873_s2 = inlined_call_operand.vmem [shape: f32[1,128], index: 2, kind: input, shape index: {}]   ;;  %s874_s3 = inlined_call_operand.hbm [shape: f32[128,128], index: 3, kind: input, shape index: {}]   ;;  %s875_s4 = inlined_call_operand.vmem [shape: f32[1,128], index: 4, kind: input, shape index: {}]   ;;  %s876_s5 = inlined_call_operand.hbm [shape: f32[50,128], index: 5, kind: output, shape index: {}]  }
   0x1   :  { %11 = vsyncpa [#allocation4], 0 }
   0x2   :  { %13 = vsyncpa [#allocation4 + $0x1], 0  ;;  %s720_s18 = smov 0   ;;  %s722_s19 = smov 0  }
   0x3   :  { %s724_s20 = smov 0   ;;  %s726_s21 = smov 0  }
   0x4 LB: > { %s741_s22 = sadd.s32 4294967295, %s682_s21   ;;  %s475_s23 = sadd.s32 4294967294, %s682_s21   ;;  %s682_s21 = sphi %s726_s21, %s883_s21   ;;  %s678_s20 = sphi %s724_s20, %s882_s20   ;;  %s674_s19 = sphi %s722_s19, %s881_s19   ;;  %s670_s18 = sphi %s720_s18, %s880_s18  }
   0x5   : > { %s745_s24 = sadd.s32 1, %s682_s21   ;;  %s136_s25 = sadd.s32 1, %s678_s20 }
   0x6   : > { %s133_s26 = ssub.s32 %s682_s21, %s745_s24  ;;  %p146_p0 = scmp.ne.s32.totalorder %s678_s20, %s674_s19 }
   0x7   : > { %p134_p1 = scmp.eq.s32.totalorder %s133_s26, 0  ;;  %p147_p2 = scmp.eq.s32.totalorder %s741_s22, 3 }
   0x8   : > { %p152_p3 = scmp.ne.s32.totalorder %s674_s19, %s670_s18  ;;  %p153_p4 = scmp.eq.s32.totalorder %s475_s23, 3 }
   0x9   : > { %s756_s27 = scalar_select %p134_p1, %s678_s20, %s136_s25  }
   0xa   : > { %p758_p5 = por %p147_p2, %p146_p0  ;;  %p762_p6 = por %p153_p4, %p152_p3 }
   0xb   : > { %p476_p7 = scmp.ge.s32.totalorder %s682_s21, 1  ;;  %p160_p8 = scmp.lt.s32.totalorder %s682_s21, 5 }
   0xc   : > { %p525_p9 = scmp.eq.s32.totalorder %s741_s22, 0  ;;  %s177_s7 = sshll.u32 %s874_s3, 4  ;;  %s178_s7 = int_to_ptr.hbm [resolvable:$true] %s177_s7 }
   0xd   : > { %p161_p10 = pnand %p476_p7, %p160_p8  ;;  %s684_s8 = smov [#allocation2]  }
   0xe   : > { %s179_s9 = sshll.u32 %s684_s8, 4  ;;  %s685_s10 = smov 128   ;;  %s180_s9 = int_to_ptr.vmem [resolvable:$true] %s179_s9 }
   0xf   : > { %p517_p11 = pneg %p161_p10  ;;  %s686_s11 = smov 8  }
  0x10   : > { %215 = sbr.rel (%p161_p10) target bundleno = 590 (0x24e), region = 40 }
  0x11   : > { %p518_p12 = pnand %p525_p9, %p517_p11 }
  0x13   : > { %520 = dma.hbm_to_vmem [thread:$0]  (!%p518_p12), %s178_s7, 2048, %s180_s9, [#allocation3], %s685_s10, %s685_s10, %s686_s11  }
  0x15   : > { %661 = dma.done.wait (%p525_p9), [#allocation3], 2048  }
  0x16   : > { %663 = vsyncadd (%p525_p9), [#allocation3], 4294965248  ;;  %s779_s12 = sshll.u32 %s741_s22, 1  ;;  %v276_v0 = vld [vmem:[%s872_s1 + $0x18] sm:$0xff]  ;;  %v275_v1 = vld [vmem:[%s872_s1 + $0x10] sm:$0xff]  ;;  %vm281_vm0 = vcmask 261120  }
  0x17   : > { %p253_p13 = scmp.lt.s32.totalorder %s779_s12, 6  ;;  %300 = vmatpush.msra.mxu0 %v276_v0  ;;  %v274_v2 = vld [vmem:[%s872_s1 + $0x8] sm:$0xff]  ;;  %v328_v3 = vld [vmem:[#allocation2 + $0x78] sm:$0xff]  ;;  %v327_v4 = vld [vmem:[#allocation2 + $0x70] sm:$0xff]  ;;  %s245_s15 = sand.u32 1, %s674_s19  }
  0x18   : > { %329 = vmatpush.msra.mxu1 %v328_v3  ;;  %v273_v5 = vld [vmem:[%s872_s1] sm:$0xff]  ;;  %v326_v6 = vld [vmem:[#allocation2 + $0x68] sm:$0xff]  ;;  %496 = vmatpush.msra.mxu2 %v328_v3  ;;  %v324_v9 = vld [vmem:[#allocation2 + $0x58] sm:$0xff]  ;;  %s481_s16 = sshll.u32 %s245_s15, 4  ;;  %s811_s23 = scalar_lea.sflag [#allocation4], %s245_s15 }
  0x19   : > { %s254_s13 = scalar_select %p253_p13, %s779_s12, 6  ;;  %301 = vmatpush.msra.mxu0 %v275_v1  ;;  %v325_v8 = vld [vmem:[#allocation2 + $0x60] sm:$0xff]  ;;  %v323_v10 = vld [vmem:[#allocation2 + $0x50] sm:$0xff]  ;;  %v322_v11 = vld [vmem:[#allocation2 + $0x48] sm:$0xff] }
  0x1a   : > { %330 = vmatpush.msra.mxu1 %v327_v4  ;;  %497 = vmatpush.msra.mxu2 %v327_v4  ;;  %v321_v13 = vld [vmem:[#allocation2 + $0x40] sm:$0xff]  ;;  %v320_v14 = vld [vmem:[#allocation2 + $0x38] sm:$0xff]  ;;  %v319_v15 = vld [vmem:[#allocation2 + $0x30] sm:$0xff]  ;;  %s247_s17 = scalar_lea.vmem [#allocation5], %s481_s16  ;;  %s387_s25 = ssub.s32 (%p758_p5), 7, %s779_s12 }
  0x1b   : > { %s483_s14 = sshll.u32 %s254_s13, 3  ;;  %302 = vmatpush.msra.mxu0 %v274_v2  ;;  %v318_v16 = vld [vmem:[#allocation2 + $0x28] sm:$0xff]  ;;  %v317_v17 = vld [vmem:[#allocation2 + $0x20] sm:$0xff]  ;;  %v316_v18 = vld [vmem:[#allocation2 + $0x18] sm:$0xff]  ;;  %p388_p0 = scmp.lt.s32.totalorder (%p758_p5), %s387_s25, 2 }
  0x1c   : > { %s256_s7 = scalar_lea.vmem %s871_s0, %s483_s14  ;;  %331 = vmatpush.msra.mxu1 %v326_v6  ;;  %498 = vmatpush.msra.mxu2 %v326_v6  ;;  %v315_v19 = vld [vmem:[#allocation2 + $0x10] sm:$0xff]  ;;  %v314_v20 = vld [vmem:[#allocation2 + $0x8] sm:$0xff]  ;;  %v313_v21 = vld [vmem:[#allocation2] sm:$0xff] }
  0x1d   : > { %v267_v7 = vld [vmem:[%s256_s7] sm:$0xff]  ;;  %303 = vmatpush.msra.mxu0 %v273_v5  ;;  %v268_v12 = vld [vmem:[%s256_s7 + $0x8] sm:$0xff] }
  0x1e   : > { %484 = vmatmul.msk.f32.vlgmr.msra.gmra.mxu0 %vm281_vm0, %v267_v7  ;;  %332 = vmatpush.msra.mxu1 %v325_v8  ;;  %v565_v22 = vld [vmem:[%s873_s2] ss:$0 sm:$0xff] }
  0x1f   : > { %499 = vmatpush.msra.mxu2 %v325_v8  ;;  %v566_v29 = vld [vmem:[%s875_s4] ss:$0 sm:$0xff] }
  0x20   : > { %333 = vmatpush.msra.mxu1 %v324_v9 }
  0x21   : > { %500 = vmatpush.msra.mxu2 %v324_v9 }
  0x22   : > { %334 = vmatpush.msra.mxu1 %v323_v10 }
  0x23   : > { %501 = vmatpush.msra.mxu2 %v323_v10 }
  0x24   : > { %335 = vmatpush.msra.mxu1 %v322_v11 }
  0x25   : > { %502 = vmatpush.msra.mxu2 %v322_v11 }
  0x26   : > { %485 = vmatmul.msk.f32.gmra.mxu0 %vm281_vm0, %v268_v12  ;;  %336 = vmatpush.msra.mxu1 %v321_v13 }
  0x27   : > { %503 = vmatpush.msra.mxu2 %v321_v13 }
  0x28   : > { %337 = vmatpush.msra.mxu1 %v320_v14 }
  0x29   : > { %504 = vmatpush.msra.mxu2 %v320_v14 }
  0x2a   : > { %338 = vmatpush.msra.mxu1 %v319_v15 }
  0x2b   : > { %505 = vmatpush.msra.mxu2 %v319_v15 }
  0x2c   : > { %339 = vmatpush.msra.mxu1 %v318_v16 }
  0x2d   : > { %506 = vmatpush.msra.mxu2 %v318_v16 }
  0x2e   : > { %340 = vmatpush.msra.mxu1 %v317_v17 }
  0x2f   : > { %507 = vmatpush.msra.mxu2 %v317_v17 }
  0x30   : > { %341 = vmatpush.msra.mxu1 %v316_v18 }
  0x31   : > { %508 = vmatpush.msra.mxu2 %v316_v18 }
  0x32   : > { %342 = vmatpush.msra.mxu1 %v315_v19 }
  0x33   : > { %509 = vmatpush.msra.mxu2 %v315_v19 }
  0x34   : > { %343 = vmatpush.msra.mxu1 %v314_v20 }
  0x35   : > { %510 = vmatpush.msra.mxu2 %v314_v20 }
  0x36   : > { %344 = vmatpush.msra.mxu1 %v313_v21 }
  0x37   : > { %511 = vmatpush.msra.mxu2 %v313_v21 }
  0x9b   : > { %v305_v23 = vpop.f32.mrf.mxu0 }
  0x9c   : > { %v306_v24 = vadd.f32 %v565_v22, %v305_v23 }
  0x9e   : > { %v311_v25 = vmax.f32 %v306_v24, 0.0 }
  0xa0   : > { %345 = vmatmul.f32.vlgmr.msra.gmra.mxu1 %v311_v25 }
  0xa3   : > { %v308_v26 = vpop.f32.mrf.mxu0 }
  0xa4   : > { %v309_v27 = vadd.f32 %v565_v22, %v308_v26 }
  0xa6   : > { %v312_v28 = vmax.f32 %v309_v27, 0.0 }
  0xa8   : > { %348 = vmatmul.f32.vlgmr.msra.gmra.mxu2 %v312_v28 }
 0x11d   : > { %v346_v30 = vpop.f32.mrf.mxu1 }
 0x11e   : > { %v352_v31 = vadd.f32 %v566_v29, %v346_v30 }
 0x120   : > { %354 = vmax.xlane.f32.xlu0 %v352_v31 }
 0x12b   : > { %v349_v32 = vpop.f32.mrf.mxu2 }
 0x12c   : > { %v353_v33 = vadd.f32 %v566_v29, %v349_v32 }
 0x12e   : > { %356 = vmax.xlane.f32.xlu0 %v353_v33 }
 0x193   : > { %v355_v34 = vpop.xlane.xlu0 %354 }
 0x194   : > { %v358_v35 = vsub.f32 %v352_v31, %v355_v34 }
 0x196   : > { %v360_v36 = vmul.f32 1.442695, %v358_v35 }
 0x198   : > { %567 = vpow2.f32 %v360_v36 }
 0x19e   : > { %v568_v37 = vpop.eup %567 }
 0x19f   : > { %364 = vadd.xlane.f32.xlu1 %v568_v37 }
 0x1a1   : > { %v357_v38 = vpop.xlane.xlu0 %356 }
 0x1a2   : > { %v359_v39 = vsub.f32 %v353_v33, %v357_v38 }
 0x1a4   : > { %v362_v40 = vmul.f32 1.442695, %v359_v39 }
 0x1a6   : > { %569 = vpow2.f32 %v362_v40 }
 0x1ac   : > { %v570_v41 = vpop.eup %569 }
 0x1ad   : > { %366 = vadd.xlane.f32.xlu1 %v570_v41 }
 0x212   : > { %v365_v42 = vpop.xlane.xlu1 %364 }
 0x213   : > { %571 = vlog2.f32 %v365_v42 }
 0x219   : > { %v572_v43 = vpop.eup %571 }
 0x21a   : > { %v369_v44 = vmul.f32 0.6931472, %v572_v43 }
 0x21c   : > { %v372_v45 = vadd.f32 %v369_v44, %v355_v34 }
 0x21e   : > { %v374_v46 = vsub.f32 %v352_v31, %v372_v45 }
 0x220   : > { %376 = vst [vmem:[%s247_s17] sm:$0xff] %v374_v46  ;;  %v367_v47 = vpop.xlane.xlu1 %366 }
 0x221   : > { %573 = vlog2.f32 %v367_v47 }
 0x227   : > { %v574_v48 = vpop.eup %573 }
 0x228   : > { %v371_v49 = vmul.f32 0.6931472, %v574_v48 }
 0x22a   : > { %v373_v50 = vadd.f32 %v371_v49, %v357_v38  ;;  %385 = sbr.rel (!%p758_p5) target bundleno = 590 (0x24e), region = 48 }
 0x22c   : > { %v375_v51 = vsub.f32 %v353_v33, %v373_v50 }
 0x22e   : > { %377 = vst [vmem:[%s247_s17 + $0x8] sm:$0xff] %v375_v51 }
 0x22f   : > { %s885_s25 = smov (!%p388_p0, %s387_s25), 2 }
 0x230   : > { %s488_s26 = sshll.u32 %s885_s25, 3 }
 0x231   : > { %s391_s30 = ssub.s32 16, %s488_s26 }
 0x232   : > { %s392_s6 = sshll.u32 %s391_s30, 4 }
 0x233   : > { %393 = vsyncadd %s811_s23, %s392_s6  ;;  %p820_p1 = scmp.ne.s32.totalorder %s488_s26, 0  ;;  %s495_s28 = sshll.u32 %s741_s22, 4 }
 0x234   : > { %s396_s12 = scalar_lea.hbm %s876_s5, %s495_s28  ;;  %s398_s10 = sshll.u32 %s247_s17, 4  ;;  %s828_s10 = int_to_ptr.vmem [resolvable:$true] %s398_s10 }
 0x235   : > { %s400_s11 = sshll.u32 %s396_s12, 4  ;;  %s492_s13 = sshll.u32 %s885_s25, 7  ;;  %s830_s11 = int_to_ptr.hbm [resolvable:$true] %s400_s11 }
 0x236   : > { %s605_s14 = sshra.s32 %s828_s10, 4  ;;  %s607_s15 = sshrl.u32 %s492_s13, 4  ;;  %s606_s14 = int_to_ptr.vmem [resolvable:$true] %s605_s14 }
 0x237   : > { %s612_s16 = scalar_lea.vmem %s606_s14, %s607_s15  ;;  %s687_s22 = smov [#allocation5]  }
 0x238   : > { %p613_p2 = scmp.ne.s32.totalorder %s606_s14, %s612_s16  ;;  %s616_s26 = scalar_lea.vmem %s687_s22, 32 }
 0x239   : > { %p618_p5 = scmp.lt.s32.totalorder %s616_s26, %s612_s16 }
 0x23a   : > { %p614_p3 = pnand %p613_p2, %p820_p1 }
 0x23c   : > { %p615_p4 = pneg %p614_p3 }
 0x23e   : > { %p620_p7 = pnand %p618_p5, %p615_p4 }
 0x240   : > { %623 = shalt.err (!%p620_p7)
}
 0x241   : > { %s624_s17 = sshra.s32 %s830_s11, 4  ;;  %s635_s8 = scalar_lea.hbm %s876_s5, 56  ;;  %s625_s17 = int_to_ptr.hbm [resolvable:$true] %s624_s17 }
 0x242   : > { %s631_s30 = scalar_lea.hbm %s625_s17, %s607_s15  ;;  %p636_p11 = scmp.lt.s32.totalorder %s625_s17, %s876_s5 }
 0x243   : > { %p632_p8 = scmp.ne.s32.totalorder %s625_s17, %s631_s30  ;;  %p637_p12 = scmp.lt.s32.totalorder %s635_s8, %s631_s30 }
 0x245   : > { %p633_p9 = pnand %p632_p8, %p820_p1  ;;  %p638_p13 = por %p637_p12, %p636_p11 }
 0x247   : > { %p634_p10 = pneg %p633_p9 }
 0x249   : > { %p639_p0 = pnand %p638_p13, %p634_p10 }
 0x24b   : > { %642 = shalt.err (!%p639_p0)
}
 0x24c   : > { %s688_s14 = smov 128   ;;  %s689_s15 = smov 8  }
 0x24d   : > { %406 = dma.vmem_to_hbm [thread:$0]  (%p820_p1), %s828_s10, %s492_s13, %s830_s11, %s811_s23, %s688_s14, %s688_s14, %s689_s15  }
 0x24e PF: > { %p527_p2 = scmp.ge.s32.totalorder %s682_s21, 2  ;;  %s415_s16 = sand.u32 1, %s670_s18  }
 0x24f   : > { %s416_s22 = scalar_lea.sflag [#allocation4], %s415_s16 }
 0x250   : > { %p522_p3 = pnand %p527_p2, %p762_p6 }
 0x252   : > { %p523_p4 = pneg %p522_p3 }
 0x254   : > { %665 = dma.done.wait (%p523_p4), %s416_s22, 256  }
 0x255   : > { %667 = vsyncadd (%p523_p4), %s416_s22, 4294967040  ;;  %p16_p5 = scmp.ge.s32.totalorder %s745_s24, 6   ;;  %s880_s18 = smov %s674_s19 }
 0x256   : > { %s881_s19 = smov %s678_s20  ;;  %s882_s20 = smov %s756_s27 }
 0x257   : > { %s883_s21 = smov %s745_s24  ;;  %18 = sbr.rel (!%p16_p5) target bundleno = 4 (0x4), region = 80 }
 0x25c   :  { %422 = vsyncpa [#allocation3], 1 }
 0x25d   :  { %424 = vsyncpa [#allocation3 + $0x1], 1 }
 0x25e   :  { %425 = vsyncpa [#allocation4], 1 }
 0x25f   :  { %427 = vsyncpa [#allocation4 + $0x1], 1 }

</bundles_post_ra>
